<compile_context>
chip_gen: v7x
topology: tpu7x:2x2x1
jax: 0.10.0
libtpu: 0.0.40
codegen_flags: <defaults>
</compile_context>

<pallas_src>
import jax
import jax.numpy as jnp
from jax.experimental import pallas as pl
from jax.experimental.pallas import tpu as pltpu

_MIB = 1 << 20


def _round_up(x, m):
    return ((x + m - 1) // m) * m


def _vmem_caps():
    """(physical VMEM bytes, per-kernel working-set budget) for this chip."""
    try:
        cap = int(getattr(pltpu.get_tpu_info(), "vmem_capacity_bytes"))
        if cap <= 0:
            raise ValueError
    except Exception:  # unknown chip / API: assume the smallest (v7x, 64 MiB)
        cap = 64 * _MIB
    budget = max(16 * _MIB, min(cap - 24 * _MIB, 80 * _MIB))
    return cap, budget


def _select_tiles(M, N, E, budget, x_bytes, w_bytes, o_bytes):
    """Pick (TM, TN, TK).  Preference: keep M/N tiles big, K-tile before shrinking."""
    # K options: full depth first, then exact divisors of E (multiples of 128)
    # so no K-tail ever needs zero padding or masking.
    if E % 128 == 0:
        k_opts = [E] + [tk for tk in (2048, 1024, 512, 256, 128)
                        if tk < E and E % tk == 0]
    else:
        # TODO(synk): in-kernel K-tail masking for huge E not divisible by 128.
        k_opts = [E]

    tm_full = _round_up(min(M, 1024), 16)          # bf16 sublane packing is (16,128)
    m_opts = [tm_full] + [m for m in (512, 256, 128, 64, 32, 16) if m < tm_full]

    if N <= 512:
        n_opts = [N] + ([128] if N > 128 else [])  # W (near-)resident along N
    else:
        n_opts = ([256] if N % 256 == 0 else []) + [128]

    def ws(tm, tn, tk):
        return (2 * (tm * tk * x_bytes + tk * tn * w_bytes)   # double-buffered inputs
                + 2 * tm * tn * o_bytes                       # double-buffered output
                + tm * tn * 4                                 # f32 accumulator scratch
                + 2 * tn * 4)                                 # bias

    for tn in n_opts:              # shrink the N tile last
        for tm in m_opts:          # shrink the M tile second
            for tk in k_opts:      # K-tile first
                if ws(tm, tn, tk) <= budget:
                    return tm, tn, tk, ws(tm, tn, tk)
    tm, tn, tk = m_opts[-1], n_opts[-1], k_opts[-1]
    return tm, tn, tk, ws(tm, tn, tk)


def _linear_kernel(x_ref, w_ref, b_ref, o_ref, acc_ref):
    # x_ref: (TM, TK) activations (input dtype); w_ref: (TK, TN) compute-dtype
    # weight; b_ref: (1, TN) f32 bias; o_ref: (TM, TN); acc_ref: (TM, TN) f32.
    k = pl.program_id(2)

    @pl.when(k == 0)
    def _():
        acc_ref[...] = jnp.zeros_like(acc_ref)

    acc_ref[...] += jnp.dot(
        x_ref[...].astype(w_ref.dtype),        # bf16 x bf16 feeds the MXU
        w_ref[...],
        preferred_element_type=jnp.float32)    # f32 accumulate

    @pl.when(k == pl.num_programs(2) - 1)
    def _():
        o_ref[...] = (acc_ref[...] + b_ref[...]).astype(o_ref.dtype)


def transformer_encoder_forward(x, weight, bias, *, compute_dtype=jnp.bfloat16):
    """nn.Linear forward: out = x @ weight.T + bias.

    x: (..., E); weight: (N, E) (PyTorch layout); bias: (N,)."""
    lead = x.shape[:-1]
    N, E = weight.shape
    x2d = x.reshape(-1, E)
    M = x2d.shape[0]
    out_dtype = x.dtype

    # One-time weight prep: transpose to (E, N) for the canonical (M,K)x(K,N)
    # MXU mapping and cast to the compute dtype (it is the re-streamed operand).
    wt = weight.T.astype(compute_dtype)
    b2d = bias.reshape(1, N).astype(jnp.float32)

    cap, budget = _vmem_caps()
    x_bytes = jnp.dtype(x2d.dtype).itemsize
    w_bytes = jnp.dtype(compute_dtype).itemsize
    o_bytes = jnp.dtype(out_dtype).itemsize
    TM, TN, TK, ws = _select_tiles(M, N, E, budget, x_bytes, w_bytes, o_bytes)

    grid_m = pl.cdiv(M, TM)
    grid_n = pl.cdiv(N, TN)
    grid_k = pl.cdiv(E, TK)   # TK always divides E (chosen from its divisors)

    # Megacore (v7x: 2 TensorCores): split a 1x1 parallel grid along M when
    # there is enough work so both cores get a tile.
    if grid_m * grid_n == 1 and M > 16:
        TM = _round_up(pl.cdiv(M, 2), 16)
        grid_m = pl.cdiv(M, TM)

    # Grid order by total HBM traffic:
    #   order A (m, n, k): x read once per K pass, W re-streamed grid_m times
    #   order B (n, m, k): W read once per K pass, x re-streamed grid_n times
    m_major = (M + grid_m * N) <= (N + grid_n * M)
    if m_major:
        grid = (grid_m, grid_n, grid_k)
        x_map = lambda i, j, k: (i, k)
        w_map = lambda i, j, k: (k, j)
        b_map = lambda i, j, k: (0, j)
        o_map = lambda i, j, k: (i, j)
    else:
        grid = (grid_n, grid_m, grid_k)
        x_map = lambda j, i, k: (i, k)
        w_map = lambda j, i, k: (k, j)
        b_map = lambda j, i, k: (0, j)
        o_map = lambda j, i, k: (i, j)

    vmem_limit = int(min(max(int(1.5 * ws) + 16 * _MIB, 32 * _MIB),
                         cap - 16 * _MIB))

    out2d = pl.pallas_call(
        _linear_kernel,
        out_shape=jax.ShapeDtypeStruct((M, N), out_dtype),
        grid=grid,
        in_specs=[
            pl.BlockSpec((TM, TK), x_map),
            pl.BlockSpec((TK, TN), w_map),
            pl.BlockSpec((1, TN), b_map),
        ],
        out_specs=pl.BlockSpec((TM, TN), o_map),
        scratch_shapes=[pltpu.VMEM((TM, TN), jnp.float32)],
        compiler_params=pltpu.CompilerParams(
            dimension_semantics=("parallel", "parallel", "arbitrary"),
            vmem_limit_bytes=vmem_limit),
    )(x2d, wt, b2d)

    return out2d.reshape(*lead, N)


if __name__ == "__main__":
    # Small shapes consistent with the module's forward.
    batch, seq = 2, 8
    embed_size, expansion_size = 32, 64

    key = jax.random.PRNGKey(0)
    kx, kw, kb = jax.random.split(key, 3)

    x = jax.random.normal(kx, (batch, seq, embed_size), dtype=jnp.float32)
    # Deterministic synthetic params (PyTorch uses uniform(-1/sqrt(E), 1/sqrt(E))).
    bound = 1.0 / (embed_size ** 0.5)
    weight = jax.random.uniform(kw, (expansion_size, embed_size),
                                minval=-bound, maxval=bound, dtype=jnp.float32)
    bias = jax.random.uniform(kb, (expansion_size,),
                              minval=-bound, maxval=bound, dtype=jnp.float32)

    out = transformer_encoder_forward(x, weight, bias)
    out = jax.block_until_ready(out)
    assert out.shape == (batch, seq, expansion_size)
    assert out.dtype == x.dtype

    # Matched-precision reference (same bf16-operand / f32-accumulate math).
    ref_bf16 = (jnp.dot(x.reshape(-1, embed_size).astype(jnp.bfloat16),
                        weight.T.astype(jnp.bfloat16),
                        preferred_element_type=jnp.float32)
                + bias).reshape(batch, seq, expansion_size).astype(x.dtype)
    assert jnp.allclose(out, ref_bf16, atol=2e-3, rtol=2e-3)

    # Loose sanity check against the full-f32 nn.Linear reference.
    ref_f32 = x @ weight.T + bias
    assert jnp.allclose(out, ref_f32, atol=1e-1, rtol=1e-1)

    print("KERNEL_OK")
</pallas_src>

<mosaic_0001>
module attributes {stable_mosaic.version = 11 : i64} {
  func.func @_linear_kernel(%arg0: i32, %arg1: i32, %arg2: i32, %arg3: memref<16x32xf32, #tpu.memory_space<vmem>>, %arg4: memref<32x64xbf16, #tpu.memory_space<vmem>>, %arg5: memref<1x64xf32, #tpu.memory_space<vmem>>, %arg6: memref<16x64xf32, #tpu.memory_space<vmem>>, %arg7: memref<16x64xf32, #tpu.memory_space<vmem>>) attributes {dimension_semantics = [#tpu.dimension_semantics<parallel>, #tpu.dimension_semantics<parallel>, #tpu.dimension_semantics<arbitrary>], iteration_bounds = array<i64: 1, 1, 1>, scalar_prefetch = 0 : i64, scratch_operands = 1 : i64, tpu.core_type = #tpu.core_type<tc>, window_params = [{transform_indices = @transform_0, window_bounds = array<i64: 16, 32>}, {transform_indices = @transform_1, window_bounds = array<i64: 32, 64>}, {transform_indices = @transform_2, window_bounds = array<i64: 1, 64>}, {transform_indices = @transform_3, window_bounds = array<i64: 16, 64>}]} {
    %c0_i32 = arith.constant 0 : i32
    %0 = arith.cmpi eq, %arg2, %c0_i32 : i32
    %1 = arith.extui %0 : i1 to i32
    %c0_i32_0 = arith.constant 0 : i32
    %2 = arith.cmpi ne, %1, %c0_i32_0 : i32
    scf.if %2 {
      %cst_10 = arith.constant 0.000000e+00 : f32
      %13 = vector.broadcast %cst_10 : f32 to vector<16x64xf32>
      %c0_11 = arith.constant 0 : index
      %c0_12 = arith.constant 0 : index
      %14 = vector.load %arg7[%c0_11, %c0_12] : memref<16x64xf32, #tpu.memory_space<vmem>>, vector<16x64xf32>
      tpu.vector_store %arg7[%c0_11, %c0_12], %13 {strides = array<i32>} : memref<16x64xf32, #tpu.memory_space<vmem>>, vector<16x64xf32>,
    } else {
    }
    %c0 = arith.constant 0 : index
    %c0_1 = arith.constant 0 : index
    %3 = vector.load %arg7[%c0, %c0_1] : memref<16x64xf32, #tpu.memory_space<vmem>>, vector<16x64xf32>
    %c0_2 = arith.constant 0 : index
    %c0_3 = arith.constant 0 : index
    %4 = vector.load %arg3[%c0_2, %c0_3] : memref<16x32xf32, #tpu.memory_space<vmem>>, vector<16x32xf32>
    %5 = arith.truncf %4 : vector<16x32xf32> to vector<16x32xbf16>
    %c0_4 = arith.constant 0 : index
    %c0_5 = arith.constant 0 : index
    %6 = vector.load %arg4[%c0_4, %c0_5] : memref<32x64xbf16, #tpu.memory_space<vmem>>, vector<32x64xbf16>
    %cst = arith.constant dense<0.000000e+00> : vector<16x64xf32>
    %7 = tpu.matmul %5, %6, %cst {dimension_numbers = #tpu.dot_dimension_numbers<[1], [0], [0], [1], [0, 0, 1, 1], [], []>} : vector<16x32xbf16>, vector<32x64xbf16>, vector<16x64xf32> -> vector<16x64xf32>
    %8 = arith.addf %3, %7 : vector<16x64xf32>
    %c0_6 = arith.constant 0 : index
    %c0_7 = arith.constant 0 : index
    %9 = vector.load %arg7[%c0_6, %c0_7] : memref<16x64xf32, #tpu.memory_space<vmem>>, vector<16x64xf32>
    tpu.vector_store %arg7[%c0_6, %c0_7], %8 {strides = array<i32>} : memref<16x64xf32, #tpu.memory_space<vmem>>, vector<16x64xf32>,
    %c0_i32_8 = arith.constant 0 : i32
    %10 = arith.cmpi eq, %arg2, %c0_i32_8 : i32
    %11 = arith.extui %10 : i1 to i32
    %c0_i32_9 = arith.constant 0 : i32
    %12 = arith.cmpi ne, %11, %c0_i32_9 : i32
    scf.if %12 {
      %c0_10 = arith.constant 0 : index
      %c0_11 = arith.constant 0 : index
      %13 = vector.load %arg7[%c0_10, %c0_11] : memref<16x64xf32, #tpu.memory_space<vmem>>, vector<16x64xf32>
      %c0_12 = arith.constant 0 : index
      %c0_13 = arith.constant 0 : index
      %14 = vector.load %arg5[%c0_12, %c0_13] : memref<1x64xf32, #tpu.memory_space<vmem>>, vector<1x64xf32>
      %15 = vector.broadcast %14 : vector<1x64xf32> to vector<16x64xf32>
      %16 = arith.addf %13, %15 : vector<16x64xf32>
      %c0_14 = arith.constant 0 : index
      %c0_15 = arith.constant 0 : index
      %17 = vector.load %arg6[%c0_14, %c0_15] : memref<16x64xf32, #tpu.memory_space<vmem>>, vector<16x64xf32>
      tpu.vector_store %arg6[%c0_14, %c0_15], %16 {strides = array<i32>} : memref<16x64xf32, #tpu.memory_space<vmem>>, vector<16x64xf32>,
    } else {
    }
    return
  }
  func.func @transform_0(%arg0: i32, %arg1: i32, %arg2: i32) -> (i32, i32) {
    %c0_i32 = arith.constant 0 : i32
    return %arg0, %arg2 : i32, i32
  }
  func.func @transform_1(%arg0: i32, %arg1: i32, %arg2: i32) -> (i32, i32) {
    %c0_i32 = arith.constant 0 : i32
    return %arg2, %arg1 : i32, i32
  }
  func.func @transform_2(%arg0: i32, %arg1: i32, %arg2: i32) -> (i32, i32) {
    %c0_i32 = arith.constant 0 : i32
    %c0_i32_0 = arith.constant 0 : i32
    return %c0_i32, %arg1 : i32, i32
  }
  func.func @transform_3(%arg0: i32, %arg1: i32, %arg2: i32) -> (i32, i32) {
    %c0_i32 = arith.constant 0 : i32
    return %arg0, %arg1 : i32, i32
  }
}

</mosaic_0001>

<bundles_post_ra>
// kernel: tpu_custom_call.1
= control target key start
LH: loop header
LB: loop body
LE: loop exit
PB: predicated region body
PF: predicated region fallthrough
CT: control target
= control target key end

     0   :  { %8 = vsyncpa [#allocation4], 0  ;;  %s334_s0 = inlined_call_operand.hbm [shape: f32[16,32], index: 0, kind: input, shape index: {}]   ;;  %s335_s1 = inlined_call_operand.hbm [shape: bf16[32,64], index: 1, kind: input, shape index: {}]   ;;  %s336_s2 = inlined_call_operand.vmem [shape: f32[1,64], index: 2, kind: input, shape index: {}]   ;;  %s337_s3 = inlined_call_operand.hbm [shape: f32[16,64], index: 3, kind: output, shape index: {}]  }
   0x1   :  { %9 = vsyncpa [#allocation7], 0 }
   0x2   :  { %10 = vsyncpa [#allocation5], 0  ;;  %s254_s12 = smov [#allocation3]   ;;  %s182_s16 = scalar_lea.hbm %s334_s0, 256 }
   0x3   :  { %s16_s13 = sshll.u32 %s254_s12, 4  ;;  %p183_p0 = scmp.ne.s32.totalorder %s334_s0, %s182_s16  ;;  %s17_s13 = int_to_ptr.vmem [resolvable:$true] %s16_s13 }
   0x4   :  { %p186_p1 = scmp.lt.u32.totalorder %s182_s16, %s334_s0 }
   0x6   :  { %p188_p2 = pnand %p186_p1, %p183_p0 }
   0x8   :  { %191 = shalt.err (!%p188_p2)
}
   0x9   :  { %s192_s21 = scalar_lea.vmem %s17_s13, 256  ;;  %p197_p4 = scmp.lt.s32.totalorder %s17_s13, %s17_s13 }
   0xa   :  { %p193_p3 = scmp.ne.s32.totalorder %s17_s13, %s192_s21  ;;  %p198_p5 = scmp.lt.s32.totalorder %s192_s21, %s192_s21 }
   0xc   :  { %p199_p6 = por %p198_p5, %p197_p4 }
   0xe   :  { %p200_p7 = pnand %p199_p6, %p193_p3 }
  0x10   :  { %203 = shalt.err (!%p200_p7)
}
  0x11   :  { %s255_s22 = smov 128   ;;  %s256_s23 = smov 8  }
  0x12   :  { %22 = dma.hbm_to_vmem [thread:$0]  %s334_s0, 256, %s17_s13, [#allocation4], %s255_s22, %s255_s22, %s256_s23  }
  0x13   :  { %s257_s26 = smov [#allocation6]   ;;  %s204_s30 = scalar_lea.hbm %s335_s1, 256 }
  0x14   :  { %s28_s27 = sshll.u32 %s257_s26, 4  ;;  %p205_p8 = scmp.ne.s32.totalorder %s335_s1, %s204_s30  ;;  %s29_s27 = int_to_ptr.vmem [resolvable:$true] %s28_s27 }
  0x15   :  { %p208_p9 = scmp.lt.u32.totalorder %s204_s30, %s335_s1 }
  0x17   :  { %p210_p10 = pnand %p208_p9, %p205_p8 }
  0x19   :  { %213 = shalt.err (!%p210_p10)
}
  0x1a   :  { %s214_s8 = scalar_lea.vmem %s29_s27, 256  ;;  %p219_p12 = scmp.lt.s32.totalorder %s29_s27, %s29_s27 }
  0x1b   :  { %p215_p11 = scmp.ne.s32.totalorder %s29_s27, %s214_s8  ;;  %p220_p13 = scmp.lt.s32.totalorder %s214_s8, %s214_s8 }
  0x1d   :  { %p221_p0 = por %p220_p13, %p219_p12 }
  0x1f   :  { %p222_p1 = pnand %p221_p0, %p215_p11 }
  0x21   :  { %225 = shalt.err (!%p222_p1)
}
  0x22   :  { %s258_s0 = smov 64   ;;  %s259_s9 = smov 4  }
  0x23   :  { %34 = dma.hbm_to_vmem [thread:$0]  %s335_s1, 256, %s29_s27, [#allocation7], %s258_s0, %s258_s0, %s259_s9  }
  0x24   :  { %248 = dma.done.wait [#allocation4], 256  }
  0x25   :  { %249 = vsyncadd [#allocation4], 4294967040 }
  0x26   :  { %250 = dma.done.wait [#allocation7], 256  }
  0x27   :  { %251 = vsyncadd [#allocation7], 4294967040  ;;  %vm48_vm0 = vcmask 523264   ;;  %v260_v0 = vmov 0.0   ;;  %vm261_vm1 = vmmov 0   ;;  %v180_v1 = vld [vmem:[#allocation6] sm:$0xff]  }
  0x28   :  { %49 = vst.msk [vmem:[#allocation2] sm:$0xff] %vm48_vm0, %v260_v0  ;;  %50 = vst.msk [vmem:[#allocation2 + $0x8] sm:$0xff] %vm48_vm0, %v260_v0  ;;  %163 = vmatprep.subr.bf16.mxu0 %v260_v0  ;;  %167 = vmatprep.mubr.msk.bf16.mxu0 %vm261_vm1, %v260_v0  ;;  %v181_v2 = vld [vmem:[#allocation6 + $0x8] sm:$0xff]   ;;  %v53_v3 = vld [vmem:[#allocation3] sm:$0xff]  ;;  %vm72_vm2 = vcmask 261120   ;;  %s262_s13 = smov [#allocation8]  }
  0x29   :  { %164 = vmatpush3.bf16.msra.mxu0 %v180_v1  ;;  %v54_v4 = vld [vmem:[#allocation3 + $0x8] sm:$0xff]  ;;  %v159_v14 = vld [vmem:[%s336_s2] ss:$0 sm:$0xff]  ;;  %s143_s14 = sshll.u32 %s262_s13, 4  ;;  %s144_s14 = int_to_ptr.vmem [resolvable:$true] %s143_s14 }
  0x2a   :  { %165 = vmatprep.subr.bf16.mxu0 %v260_v0  ;;  %v55_v5 = vpack.c.bf16 %v54_v4, %v53_v3  ;;  %s226_s15 = scalar_lea.vmem %s144_s14, 256  ;;  %p231_p3 = scmp.lt.s32.totalorder %s144_s14, %s144_s14 }
  0x2b   :  { %p227_p2 = scmp.ne.s32.totalorder %s144_s14, %s226_s15  ;;  %p232_p4 = scmp.lt.s32.totalorder %s226_s15, %s226_s15 }
  0x2d   :  { %166 = vmatpush3.bf16.msra.mxu0 %v181_v2  ;;  %p233_p5 = por %p232_p4, %p231_p3 }
  0x2f   :  { %v51_v6 = vld [vmem:[#allocation2] sm:$0xff]  ;;  %v52_v8 = vld [vmem:[#allocation2 + $0x8] sm:$0xff]  ;;  %p234_p6 = pnand %p233_p5, %p227_p2 }
  0x30   :  { %168 = vmatmul.mubr.msk.bf16.vlgmr.msra.gmra.mrb[0].mxu0 %vm72_vm2, %v55_v5 }
 0x103   :  { %v110_v7 = vpop.f32.mrb[0].mxu0 }
 0x104   :  { %v117_v9 = vadd.f32 %v110_v7, %v51_v6  ;;  %v169_v10 = vpop.f32.mrb[1].mxu0 }
 0x105   :  { %v113_v11 = vpop.f32.mrb[2].mxu0 }
 0x106   :  { %120 = vst.msk [vmem:[#allocation2] sm:$0xff] %vm48_vm0, %v117_v9  ;;  %v118_v12 = vadd.f32 %v113_v11, %v52_v8  ;;  %v170_v13 = vpop.f32.mrb[3].mxu0 }
 0x108   :  { %121 = vst.msk [vmem:[#allocation2 + $0x8] sm:$0xff] %vm48_vm0, %v118_v12 }
 0x10d   :  { %v125_v15 = vld [vmem:[#allocation2] sm:$0xff] }
 0x10e   :  { %v134_v16 = vadd.f32 %v159_v14, %v125_v15 }
 0x10f   :  { %v126_v17 = vld [vmem:[#allocation2 + $0x8] sm:$0xff] }
 0x110   :  { %v135_v18 = vadd.f32 %v159_v14, %v126_v17  ;;  %136 = vst.msk [vmem:[#allocation8] sm:$0xff] %vm48_vm0, %v134_v16 }
 0x112   :  { %137 = vst.msk [vmem:[#allocation8 + $0x8] sm:$0xff] %vm48_vm0, %v135_v18 }
 0x113   :  { %237 = shalt.err (!%p234_p6)
}
 0x114   :  { %s238_s17 = scalar_lea.hbm %s337_s3, 256 }
 0x115   :  { %p239_p7 = scmp.ne.s32.totalorder %s337_s3, %s238_s17  ;;  %p242_p8 = scmp.lt.u32.totalorder %s238_s17, %s337_s3 }
 0x117   :  { %p244_p9 = pnand %p242_p8, %p239_p7 }
 0x119   :  { %247 = shalt.err (!%p244_p9)
}
 0x11a   :  { %149 = dma.vmem_to_hbm [thread:$0]  %s144_s14, 256, %s337_s3, [#allocation5], %s255_s22, %s255_s22, %s256_s23  }
 0x11b   :  { %252 = dma.done.wait [#allocation5], 256  }
 0x11c   :  { %253 = vsyncadd [#allocation5], 4294967040 }
 0x11d   :  { %153 = vsyncpa [#allocation4], 1 }
 0x11e   :  { %154 = vsyncpa [#allocation7], 1 }
 0x11f   :  { %155 = vsyncpa [#allocation5], 1 }

</bundles_post_ra>
